<compile_context>
chip_gen: v6e
topology: v6e:2x2x1
jax: 0.10.0
libtpu: 0.0.40
codegen_flags: <defaults>
</compile_context>

<pallas_src>
import jax
import jax.numpy as jnp
from jax.experimental import pallas as pl
from jax.experimental.pallas import tpu as pltpu

EPS = 1e-5  # torch.nn.InstanceNorm1d default eps


# --------------------------------------------------------------------------
# Kernel: instance norm over T + style modulation, per (batch, channel-tile).
# Blocks: gamma/beta (1, C_pad, 1) resident per batch, x/out (1, tc, T).
# --------------------------------------------------------------------------
def make_adain_kernel(tc):
    def kernel(gamma_ref, beta_ref, x_ref, o_ref):
        off = pl.multiple_of(pl.program_id(1) * tc, tc)
        gamma = gamma_ref[0, pl.ds(off, tc), :]              # (tc, 1) f32
        beta = beta_ref[0, pl.ds(off, tc), :]                # (tc, 1) f32

        xf = x_ref[0].astype(jnp.float32)                    # (tc, T)
        inv_t = jnp.float32(1.0 / xf.shape[-1])

        # one-pass moments over the time axis (f32 accumulation)
        m1 = jnp.sum(xf, axis=-1, keepdims=True) * inv_t     # (tc, 1)
        m2 = jnp.sum(xf * xf, axis=-1, keepdims=True) * inv_t
        var = jnp.maximum(m2 - m1 * m1, 0.0)

        # fused modulation: out = (1+gamma)*(x-m1)*rsqrt(var+eps) + beta
        scale = (1.0 + gamma) * jax.lax.rsqrt(var + EPS)     # (tc, 1)
        shift = beta - scale * m1                            # (tc, 1)

        o_ref[...] = (xf * scale + shift).astype(o_ref.dtype)[None]

    return kernel


# --------------------------------------------------------------------------
# Tiling helpers
# --------------------------------------------------------------------------
def _round_up(x, m):
    return -(-x // m) * m


def _vmem_plan():
    """Return (per-block byte budget, scoped vmem_limit_bytes) per generation."""
    vmem = 64 << 20                       # conservative default (v7x per-TC VMEM)
    try:
        vmem = pltpu.get_tpu_info().vmem_capacity_bytes
    except Exception:
        pass
    if vmem >= (128 << 20):               # v5e / v6e: 128 MiB physical VMEM
        return 8 << 20, 64 << 20
    return 4 << 20, 40 << 20              # v7x: 64 MiB physical VMEM


def _channel_tile(B, C, T, dtype, budget_bytes):
    """Channel tile aligned to the dtype's sublane packing, sized to budget."""
    itemsize = jnp.dtype(dtype).itemsize
    sub = max(8, 32 // itemsize)          # 8 for f32, 16 for bf16, 32 for int8/fp8
    # Sub-32-bit inputs materialize an f32 copy (+ temps) inside the kernel.
    eff = budget_bytes if itemsize >= 4 else budget_bytes // 3
    tc = max(sub, (eff // (T * itemsize)) // sub * sub)
    c_ceil = _round_up(C, sub)
    tc = min(tc, c_ceil)
    # Guarantee >=2 parallel grid steps when B == 1 (keeps both v7x TCs busy).
    if B == 1 and tc >= c_ceil and C > sub:
        tc = _round_up(c_ceil // 2, sub)
    return tc, sub


# --------------------------------------------------------------------------
# Wrapper
# --------------------------------------------------------------------------
def adain1d(x, s, w, bias):
    """x: (B, C, T), s: (B, S), w: (2C, S) torch nn.Linear layout, bias: (2C,)."""
    B, C, T = x.shape

    # Style projection in plain JAX: a tiny (B,S)x(S,2C) GEMV, far below even
    # one MXU pass — not worth a kernel launch + an HBM round trip for h.
    h = (jnp.asarray(s, jnp.float32) @ jnp.asarray(w, jnp.float32).T
         + jnp.asarray(bias, jnp.float32))                   # (B, 2C)
    gamma = h[:, :C]                                         # (B, C)
    beta = h[:, C:]                                          # (B, C)

    budget, vmem_limit = _vmem_plan()
    tc, _sub = _channel_tile(B, C, T, x.dtype, budget)
    n_ct = -(-C // tc)
    c_pad = n_ct * tc
    # TODO(synk): for extremely long T (where even a `sub`-row tile exceeds the
    # budget) a third "arbitrary" grid axis over T with sum/sumsq accumulators
    # would be needed; not implemented here.

    # Pad gamma/beta (tiny arrays) so the in-kernel pl.ds slice never reads OOB
    # on the ragged last channel block; padded rows are computed but masked on
    # store by Pallas (output array is only (B, C, T)).
    if c_pad != C:
        gamma = jnp.pad(gamma, ((0, 0), (0, c_pad - C)))
        beta = jnp.pad(beta, ((0, 0), (0, c_pad - C)))
    gamma = gamma.reshape(B, c_pad, 1)
    beta = beta.reshape(B, c_pad, 1)

    # NOTE: T stays untiled and is the output's last (lane) dim.  If T is not a
    # multiple of 128 the trailing lanes use masked stores; padding x in the
    # wrapper would cost a full extra HBM copy on a memory-bound kernel, so we
    # leave T-padding to the caller.
    return pl.pallas_call(
        make_adain_kernel(tc),
        out_shape=jax.ShapeDtypeStruct((B, C, T), x.dtype),
        grid_spec=pltpu.PrefetchScalarGridSpec(
            num_scalar_prefetch=0,
            grid=(B, n_ct),
            in_specs=[
                # gamma/beta: resident across the channel-tile axis (block
                # index constant in c ⇒ fetched once per batch step).
                pl.BlockSpec((1, c_pad, 1), lambda b, c: (b, 0, 0)),
                pl.BlockSpec((1, c_pad, 1), lambda b, c: (b, 0, 0)),
                pl.BlockSpec((1, tc, T), lambda b, c: (b, c, 0)),   # x tile
            ],
            out_specs=pl.BlockSpec((1, tc, T), lambda b, c: (b, c, 0)),
        ),
        compiler_params=pltpu.CompilerParams(
            dimension_semantics=("parallel", "parallel"),
            vmem_limit_bytes=vmem_limit,
        ),
    )(gamma, beta, x)


def adain1d_reference(x, s, w, bias):
    """Pure-JAX reference mirroring the PyTorch forward."""
    h = s @ w.T + bias                                       # (B, 2C)
    C = x.shape[1]
    gamma = h[:, :C][:, :, None]                             # (B, C, 1)
    beta = h[:, C:][:, :, None]
    mean = jnp.mean(x, axis=-1, keepdims=True)
    var = jnp.mean(jnp.square(x - mean), axis=-1, keepdims=True)  # biased var
    xn = (x - mean) / jnp.sqrt(var + EPS)
    return (1.0 + gamma) * xn + beta


if __name__ == "__main__":
    # Small shapes consistent with the module: batch=2, style_dim=32,
    # num_features=8 channels, sequence length T=128.
    B, S, C, T = 2, 32, 8, 128

    key = jax.random.PRNGKey(0)
    kx, ks, kw, kb = jax.random.split(key, 4)

    x = jax.random.normal(kx, (B, C, T), dtype=jnp.float32)
    s = jax.random.normal(ks, (B, S), dtype=jnp.float32)

    # Deterministic synthetic parameters for nn.Linear(style_dim, 2*num_features).
    bound = 1.0 / (S ** 0.5)
    w = jax.random.uniform(kw, (2 * C, S), minval=-bound, maxval=bound,
                           dtype=jnp.float32)
    bias = jax.random.uniform(kb, (2 * C,), minval=-bound, maxval=bound,
                              dtype=jnp.float32)

    out = jax.block_until_ready(adain1d(x, s, w, bias))
    ref = adain1d_reference(x, s, w, bias)

    assert out.shape == (B, C, T)
    assert jnp.allclose(out, ref, atol=1e-4, rtol=1e-4), "mismatch vs reference"

    print("KERNEL_OK")
</pallas_src>

<mosaic_0001>
module attributes {stable_mosaic.version = 11 : i64} {
  func.func @kernel(%arg0: i32, %arg1: i32, %arg2: memref<1x8x1xf32, #tpu.memory_space<vmem>>, %arg3: memref<1x8x1xf32, #tpu.memory_space<vmem>>, %arg4: memref<1x8x128xf32, #tpu.memory_space<vmem>>, %arg5: memref<1x8x128xf32, #tpu.memory_space<vmem>>) attributes {dimension_semantics = [#tpu.dimension_semantics<parallel>, #tpu.dimension_semantics<parallel>], iteration_bounds = array<i64: 2, 1>, scalar_prefetch = 0 : i64, scratch_operands = 0 : i64, tpu.core_type = #tpu.core_type<tc>, window_params = [{transform_indices = @transform_0, window_bounds = array<i64: 1, 8, 1>}, {transform_indices = @transform_1, window_bounds = array<i64: 1, 8, 1>}, {transform_indices = @transform_2, window_bounds = array<i64: 1, 8, 128>}, {transform_indices = @transform_3, window_bounds = array<i64: 1, 8, 128>}]} {
    %c8_i32 = arith.constant 8 : i32
    %0 = arith.muli %arg1, %c8_i32 : i32
    %1 = tpu.assume_multiple %0, 8 : i32
    %c0 = arith.constant 0 : index
    %2 = arith.index_cast %1 : i32 to index
    %c0_0 = arith.constant 0 : index
    %3 = vector.load %arg2[%c0, %2, %c0_0] : memref<1x8x1xf32, #tpu.memory_space<vmem>>, vector<1x8x1xf32>
    %4 = vector.shape_cast %3 : vector<1x8x1xf32> to vector<8x1xf32>
    %c0_1 = arith.constant 0 : index
    %5 = arith.index_cast %1 : i32 to index
    %c0_2 = arith.constant 0 : index
    %6 = vector.load %arg3[%c0_1, %5, %c0_2] : memref<1x8x1xf32, #tpu.memory_space<vmem>>, vector<1x8x1xf32>
    %7 = vector.shape_cast %6 : vector<1x8x1xf32> to vector<8x1xf32>
    %c0_3 = arith.constant 0 : index
    %c0_4 = arith.constant 0 : index
    %c0_5 = arith.constant 0 : index
    %8 = vector.load %arg4[%c0_3, %c0_4, %c0_5] : memref<1x8x128xf32, #tpu.memory_space<vmem>>, vector<1x8x128xf32>
    %9 = vector.shape_cast %8 : vector<1x8x128xf32> to vector<8x128xf32>
    %cst = arith.constant dense<0.000000e+00> : vector<8xf32>
    %10 = vector.multi_reduction <add>, %9, %cst [1] : vector<8x128xf32> to vector<8xf32>
    %11 = vector.shape_cast %10 : vector<8xf32> to vector<8x1xf32>
    %cst_6 = arith.constant 7.812500e-03 : f32
    %12 = vector.broadcast %cst_6 : f32 to vector<8x1xf32>
    %13 = arith.mulf %11, %12 : vector<8x1xf32>
    %14 = arith.mulf %9, %9 : vector<8x128xf32>
    %cst_7 = arith.constant dense<0.000000e+00> : vector<8xf32>
    %15 = vector.multi_reduction <add>, %14, %cst_7 [1] : vector<8x128xf32> to vector<8xf32>
    %16 = vector.shape_cast %15 : vector<8xf32> to vector<8x1xf32>
    %cst_8 = arith.constant 7.812500e-03 : f32
    %17 = vector.broadcast %cst_8 : f32 to vector<8x1xf32>
    %18 = arith.mulf %16, %17 : vector<8x1xf32>
    %19 = arith.mulf %13, %13 : vector<8x1xf32>
    %20 = arith.subf %18, %19 : vector<8x1xf32>
    %cst_9 = arith.constant 0.000000e+00 : f32
    %21 = vector.broadcast %cst_9 : f32 to vector<8x1xf32>
    %22 = arith.maximumf %20, %21 : vector<8x1xf32>
    %cst_10 = arith.constant 1.000000e+00 : f32
    %23 = vector.broadcast %cst_10 : f32 to vector<8x1xf32>
    %24 = arith.addf %23, %4 : vector<8x1xf32>
    %cst_11 = arith.constant 9.99999974E-6 : f32
    %25 = vector.broadcast %cst_11 : f32 to vector<8x1xf32>
    %26 = arith.addf %22, %25 : vector<8x1xf32>
    %27 = math.rsqrt %26 : vector<8x1xf32>
    %28 = arith.mulf %24, %27 : vector<8x1xf32>
    %29 = arith.mulf %28, %13 : vector<8x1xf32>
    %30 = arith.subf %7, %29 : vector<8x1xf32>
    %31 = vector.broadcast %28 : vector<8x1xf32> to vector<8x128xf32>
    %32 = arith.mulf %9, %31 : vector<8x128xf32>
    %33 = vector.broadcast %30 : vector<8x1xf32> to vector<8x128xf32>
    %34 = arith.addf %32, %33 : vector<8x128xf32>
    %35 = vector.shape_cast %34 : vector<8x128xf32> to vector<1x8x128xf32>
    %c0_12 = arith.constant 0 : index
    %c0_13 = arith.constant 0 : index
    %c0_14 = arith.constant 0 : index
    %36 = vector.load %arg5[%c0_12, %c0_13, %c0_14] : memref<1x8x128xf32, #tpu.memory_space<vmem>>, vector<1x8x128xf32>
    tpu.vector_store %arg5[%c0_12, %c0_13, %c0_14], %35 {strides = array<i32>} : memref<1x8x128xf32, #tpu.memory_space<vmem>>, vector<1x8x128xf32>,
    return
  }
  func.func @transform_0(%arg0: i32, %arg1: i32) -> (i32, i32, i32) {
    %c0_i32 = arith.constant 0 : i32
    %c0_i32_0 = arith.constant 0 : i32
    %c0_i32_1 = arith.constant 0 : i32
    return %arg0, %c0_i32, %c0_i32_0 : i32, i32, i32
  }
  func.func @transform_1(%arg0: i32, %arg1: i32) -> (i32, i32, i32) {
    %c0_i32 = arith.constant 0 : i32
    %c0_i32_0 = arith.constant 0 : i32
    %c0_i32_1 = arith.constant 0 : i32
    return %arg0, %c0_i32, %c0_i32_0 : i32, i32, i32
  }
  func.func @transform_2(%arg0: i32, %arg1: i32) -> (i32, i32, i32) {
    %c0_i32 = arith.constant 0 : i32
    %c0_i32_0 = arith.constant 0 : i32
    return %arg0, %arg1, %c0_i32 : i32, i32, i32
  }
  func.func @transform_3(%arg0: i32, %arg1: i32) -> (i32, i32, i32) {
    %c0_i32 = arith.constant 0 : i32
    %c0_i32_0 = arith.constant 0 : i32
    return %arg0, %arg1, %c0_i32 : i32, i32, i32
  }
}

</mosaic_0001>

<bundles_post_ra>
// kernel: tpu_custom_call.1
= control target key start
LH: loop header
LB: loop body
LE: loop exit
PB: predicated region body
PF: predicated region fallthrough
CT: control target
= control target key end

     0   :  { %8 = vsyncpa [#allocation3], 0  ;;  %s652_s0 = inlined_call_operand.vmem [shape: f32[2,8,1], index: 0, kind: input, shape index: {}]   ;;  %s653_s1 = inlined_call_operand.vmem [shape: f32[2,8,1], index: 1, kind: input, shape index: {}]   ;;  %s654_s2 = inlined_call_operand.vmem [shape: f32[2,8,128], index: 2, kind: input, shape index: {}]   ;;  %s655_s3 = inlined_call_operand.hbm [shape: f32[2,8,128], index: 3, kind: output, shape index: {}]  }
   0x1   :  { %10 = vsyncpa [#allocation3 + $0x1], 0  ;;  %s547_s12 = smov 0   ;;  %s549_s13 = smov 0  }
   0x2   :  { %s551_s14 = smov 0   ;;  %s553_s15 = smov 0  }
   0x3   :  { %s555_s16 = smov 0   ;;  %s557_s17 = smov 0  }
   0x4 LB: > { %s374_s18 = sadd.s32 4294967295, %s523_s17   ;;  %s375_s19 = sadd.s32 4294967294, %s523_s17   ;;  %s523_s17 = sphi %s557_s17, %s16_s17   ;;  %s519_s16 = sphi %s555_s16, %s662_s16   ;;  %s515_s15 = sphi %s553_s15, %s661_s15   ;;  %s511_s14 = sphi %s551_s14, %s660_s14   ;;  %s507_s13 = sphi %s549_s13, %s659_s13   ;;  %s503_s12 = sphi %s547_s12, %s658_s12  }
   0x5   : > { %s28_s20 = sadd.s32 1, %s519_s16  ;;  %s117_s21 = sadd.s32 1, %s511_s14 }
   0x6   : > { %p30_p0 = scmp.ge.s32.totalorder %s28_s20, 2  ;;  %p127_p1 = scmp.ne.s32.totalorder %s511_s14, %s507_s13 }
   0x7   : > { %p128_p2 = scmp.eq.s32.totalorder %s374_s18, 1  ;;  %p133_p3 = scmp.ne.s32.totalorder %s507_s13, %s503_s12 }
   0x8   : > { %s664_s20 = smov (%p30_p0, %s28_s20), 0  ;;  %p134_p5 = scmp.eq.s32.totalorder %s375_s19, 1 }
   0x9   : > { %p587_p4 = por %p128_p2, %p127_p1  ;;  %s112_s23 = ssub.s32 %s519_s16, %s664_s20 }
   0xa   : > { %p378_p6 = scmp.ge.s32.totalorder %s523_s17, 1  ;;  %p115_p7 = scmp.eq.s32.totalorder %s112_s23, 0 }
   0xb   : > { %p594_p8 = por %p134_p5, %p133_p3  ;;  %p176_p9 = scmp.lt.s32.totalorder %s523_s17, 3 }
   0xc   : > { %s600_s25 = scalar_select %p115_p7, %s511_s14, %s117_s21  }
   0xd   : > { %p177_p10 = pnand %p378_p6, %p176_p9 }
   0xe   : > { %p210_p11 = scmp.lt.s32.totalorder (!%p177_p10), %s515_s15, 1  ;;  %s207_s10 = sand.u32 (!%p177_p10), 1, %s507_s13  }
   0xf   : > { %180 = sbr.rel (%p177_p10) target bundleno = 334 (0x14e), region = 32  ;;  %s379_s11 = sshll.u32 (!%p177_p10), %s207_s10, 3 }
  0x10   : > { %s384_s18 = sshll.u32 (!%p177_p10), %s515_s15, 7  ;;  %s209_s19 = scalar_lea.vmem (!%p177_p10), [#allocation2], %s379_s11 }
  0x11   : > { %s275_s21 = sshll.u32 (!%p177_p10), %s209_s19, 4  ;;  %s261_s28 = scalar_lea.sflag (!%p177_p10), [#allocation3], %s207_s10  ;;  %s276_s21 = int_to_ptr.vmem [resolvable:$true] %s275_s21 }
  0x12   : > { %s447_s29 = scalar_lea.vmem (!%p177_p10), %s276_s21, 128 }
  0x13   : > { %p448_p12 = scmp.ne.s32.totalorder (!%p177_p10), %s276_s21, %s447_s29 }
  0x14   : > { %s211_s26 = scalar_select %p210_p11, %s515_s15, 1  ;;  %v525_v2 = vmov 0  }
  0x15   : > { %443 = vset.pattern.permute.xlu1 %v525_v2  ;;  %444 = vset.pattern.permute.xlu0 %v525_v2  ;;  %p449_p13 = pnand %p448_p12, %p587_p4 }
  0x16   : > { %s380_s27 = sshll.u32 %s211_s26, 3 }
  0x17   : > { %s224_s30 = scalar_lea.vmem %s654_s2, %s380_s27  ;;  %s213_s6 = scalar_lea.vmem %s652_s0, %s380_s27 }
  0x18   : > { %v230_v0 = vld [vmem:[%s224_s30] sm:$0xff]  ;;  %s217_s9 = scalar_lea.vmem %s653_s1, %s380_s27  ;;  %s273_s27 = scalar_lea.hbm %s655_s3, %s384_s18 }
  0x19   : > { %231 = vadd.xlane.f32.xlu0 %v230_v0  ;;  %v234_v1 = vmul.f32 %v230_v0, %v230_v0  ;;  %v227_v11 = vld [vmem:[%s213_s6] sm:$0xff]  ;;  %p450_p0 = pneg %p449_p13  ;;  %s526_s30 = smov [#allocation2]  }
  0x1a   : > { %v241_v12 = vadd.f32 1.0, %v227_v11  ;;  %v229_v15 = vld [vmem:[%s217_s9] sm:$0xff]  ;;  %s451_s4 = sshll.u32 %s526_s30, 4  ;;  %s452_s4 = int_to_ptr.vmem [resolvable:$false] %s451_s4 }
  0x1b   : > { %s453_s15 = scalar_lea.vmem %s452_s4, 256  ;;  %p454_p1 = scmp.lt.s32.totalorder %s276_s21, %s452_s4 }
  0x1c   : > { %p455_p2 = scmp.lt.s32.totalorder %s453_s15, %s447_s29 }
  0x1d   : > { %235 = vadd.xlane.f32.xlu0 %v234_v1 }
  0x1e   : > { %p456_p3 = por %p455_p2, %p454_p1 }
  0x20   : > { %p457_p5 = pnand %p456_p3, %p450_p0 }
  0xa2   : > { %v232_v3 = vpop.xlane.xlu0 %231 }
  0xa3   : > { %v233_v4 = vmul.f32 0.0078125, %v232_v3 }
  0xa5   : > { %v238_v6 = vmul.f32 %v233_v4, %v233_v4 }
  0xa6   : > { %v236_v5 = vpop.xlane.xlu0 %235 }
  0xa7   : > { %v237_v7 = vmul.f32 0.0078125, %v236_v5 }
  0xa9   : > { %v239_v8 = vsub.f32 %v237_v7, %v238_v6 }
  0xab   : > { %v240_v9 = vmax.f32 %v239_v8, 0.0 }
  0xad   : > { %v242_v10 = vadd.f32 1e-05, %v240_v9 }
  0xaf   : > { %445 = vrsqrt.f32 %v242_v10 }
  0xbc   : > { %v446_v13 = vpop.eup %445 }
  0xbd   : > { %v244_v14 = vmul.f32 %v446_v13, %v241_v12 }
  0xbf   : > { %249 = vperm.xlu1 %443, %v244_v14   ;;  %v245_v16 = vmul.f32 %v244_v14, %v233_v4 }
  0xc1   : > { %v246_v17 = vsub.f32 %v229_v15, %v245_v16 }
  0xc3   : > { %255 = vperm.xlu1 %443, %v246_v17  }
 0x13a   : > { %v250_v18 = vpop.permute.xlu1 %249 }
 0x13b   : > { %v252_v19 = vmul.f32 %v250_v18, %v230_v0 }
 0x13e   : > { %v256_v20 = vpop.permute.xlu1 %255 }
 0x13f   : > { %v258_v21 = vadd.f32 %v256_v20, %v252_v19 }
 0x141   : > { %259 = vst [vmem:[%s209_s19] sm:$0xff] %v258_v21 }
 0x142   : > { %460 = shalt.err (!%p457_p5)
}
 0x143   : > { %s461_s5 = scalar_lea.hbm %s273_s27, 128  ;;  %s465_s8 = scalar_lea.hbm %s655_s3, 256 }
 0x144   : > { %p462_p6 = scmp.ne.s32.totalorder %s273_s27, %s461_s5  ;;  %p466_p10 = scmp.lt.s32.totalorder %s273_s27, %s655_s3 }
 0x145   : > { %p467_p11 = scmp.lt.s32.totalorder %s465_s8, %s461_s5 }
 0x146   : > { %p463_p7 = pnand %p462_p6, %p587_p4 }
 0x147   : > { %p468_p12 = por %p467_p11, %p466_p10 }
 0x148   : > { %p464_p9 = pneg %p463_p7 }
 0x14a   : > { %p469_p13 = pnand %p468_p12, %p464_p9 }
 0x14c   : > { %472 = shalt.err (!%p469_p13)
}
 0x14d   : > { %387 = dma.vmem_to_hbm [thread:$0]  (%p587_p4), %s276_s21, 128, %s273_s27, %s261_s28  }
 0x14e PF: > { %p393_p0 = scmp.ge.s32.totalorder %s523_s17, 2  ;;  %s287_s11 = sand.u32 1, %s503_s12  }
 0x14f   : > { %s288_s18 = scalar_lea.sflag [#allocation3], %s287_s11 }
 0x150   : > { %p390_p1 = pnand %p393_p0, %p594_p8 }
 0x152   : > { %p391_p2 = pneg %p390_p1 }
 0x154   : > { %498 = dma.done.wait (%p391_p2), %s288_s18, 128  }
 0x155   : > { %500 = vsyncadd (%p391_p2), %s288_s18, 4294967168  ;;  %s16_s17 = sadd.s32 1, %s523_s17   ;;  %s658_s12 = smov %s507_s13 }
 0x156   : > { %p13_p3 = scmp.ge.s32.totalorder %s16_s17, 4   ;;  %s659_s13 = smov %s511_s14 }
 0x157   : > { %s660_s14 = smov %s600_s25  ;;  %s661_s15 = smov %s519_s16 }
 0x158   : > { %s662_s16 = smov %s664_s20  ;;  %15 = sbr.rel (!%p13_p3) target bundleno = 4 (0x4), region = 75 }
 0x15d   :  { %293 = vsyncpa [#allocation3], 1 }
 0x15e   :  { %295 = vsyncpa [#allocation3 + $0x1], 1 }

</bundles_post_ra>
